<compile_context>
chip_gen: v7x
topology: tpu7x:2x2x1
jax: 0.10.0
libtpu: 0.0.40
codegen_flags: <defaults>
</compile_context>

<pallas_src>
import math

import jax
import jax.numpy as jnp
from jax import lax
from jax.experimental import pallas as pl
from jax.experimental.pallas import tpu as pltpu


def _round_up(x, m):
    return ((x + m - 1) // m) * m


def _make_kernel(confidence, conf_logconf, ignore_index, tb, tv):
    n_lane_groups = tv // 128
    n_row_groups = tb // 8

    def kernel(logp_ref, tgt_ref, smooth_ref, plogp_ref, out_ref):
        j = pl.program_id(1)

        # Zero this batch-tile's accumulator block on the first vocab tile.
        @pl.when(j == 0)
        def _():
            out_ref[...] = jnp.zeros_like(out_ref)

        logp = logp_ref[...].astype(jnp.float32)   # (tb, tv) model log-probs
        tgt = tgt_ref[...]                         # (tb, 1) i32
        smooth = smooth_ref[...]                   # (1, tv) f32 smoothing row
        plogp = plogp_ref[...]                     # (1, tv) f32 smooth*log(smooth), 0 where smooth==0

        # Target column localized to this vocab tile (cheap (tb,1) subtract
        # instead of offsetting the full (tb,tv) iota).
        tgt_local = tgt - j * tv
        col = lax.broadcasted_iota(jnp.int32, (tb, tv), 1)
        is_tgt = col == tgt_local

        # model_prob (w) and model_prob*log(model_prob) (wlw) — no jnp.log here.
        w = jnp.where(is_tgt, jnp.float32(confidence), smooth)
        wlw = jnp.where(is_tgt, jnp.float32(conf_logconf), plogp)

        # KL(reduction='sum') elementwise term: w*(log w) - w*logp.
        # Columns with w == 0 also have wlw == 0 and contribute exactly 0.
        kl = wlw - w * logp                                  # (tb, tv)

        # Fold vocab lanes into a 128-wide partial (pure VPU adds, no XLU).
        part = kl[:, 0:128]
        for g in range(1, n_lane_groups):
            part = part + kl[:, g * 128:(g + 1) * 128]       # (tb, 128)

        # Rows whose target equals ignore_index (incl. padded rows) contribute 0.
        valid = (tgt != jnp.int32(ignore_index)).astype(jnp.float32)  # (tb, 1)
        part = part * valid

        # Fold batch rows into an (8, 128) partial (still pure VPU adds).
        p8 = part[0:8, :]
        for r in range(1, n_row_groups):
            p8 = p8 + part[r * 8:(r + 1) * 8, :]             # (8, 128)

        out_ref[...] += p8[None]                             # (1, 8, 128)

    return kernel


def label_smoothing_loss(output, target, one_hot, confidence, ignore_index,
                         *, tb=256, tv=2048):
    """output: (B, V) log-probs (any float dtype); target: (B,) int; one_hot: (V,) buffer."""
    B, V = output.shape
    tb = min(int(tb), _round_up(B, 8))
    tv = min(int(tv), _round_up(V, 128))
    B_pad = _round_up(B, tb)
    V_pad = _round_up(V, tv)
    n_i = B_pad // tb
    n_j = V_pad // tv

    target = target.astype(jnp.int32)
    one_hot = one_hot.astype(jnp.float32)

    # Pad only if needed. Padded rows -> target == ignore_index (masked out);
    # padded vocab columns -> smooth == 0 (contribute exactly 0); padded
    # log-probs are zeros (finite), so no NaNs can leak in.
    if B_pad != B or V_pad != V:
        output = jnp.pad(output, ((0, B_pad - B), (0, V_pad - V)))
    if B_pad != B:
        target = jnp.pad(target, (0, B_pad - B), constant_values=int(ignore_index))
    if V_pad != V:
        one_hot = jnp.pad(one_hot, (0, V_pad - V))

    target2d = target.reshape(B_pad, 1)
    smooth_row = one_hot.reshape(1, V_pad)
    # Precompute p*log(p) of the smoothing row (zero where p == 0 to avoid 0*-inf).
    plogp_row = jnp.where(
        smooth_row > 0,
        smooth_row * jnp.log(jnp.where(smooth_row > 0, smooth_row, 1.0)),
        0.0,
    ).astype(jnp.float32)

    confidence = float(confidence)
    conf_logconf = confidence * math.log(confidence) if confidence > 0.0 else 0.0

    partials = pl.pallas_call(
        _make_kernel(confidence, conf_logconf, int(ignore_index), tb, tv),
        out_shape=jax.ShapeDtypeStruct((n_i, 8, 128), jnp.float32),
        grid_spec=pltpu.PrefetchScalarGridSpec(
            num_scalar_prefetch=0,
            grid=(n_i, n_j),
            in_specs=[
                pl.BlockSpec((tb, tv), lambda i, j: (i, j)),   # log-probs tile (native dtype)
                pl.BlockSpec((tb, 1), lambda i, j: (i, 0)),    # targets (resident across j)
                pl.BlockSpec((1, tv), lambda i, j: (0, j)),    # smoothing row
                pl.BlockSpec((1, tv), lambda i, j: (0, j)),    # smooth*log(smooth) row
            ],
            out_specs=pl.BlockSpec((1, 8, 128), lambda i, j: (i, 0, 0)),
        ),
        compiler_params=pltpu.CompilerParams(
            dimension_semantics=("parallel", "arbitrary"),  # batch tiles across cores
            vmem_limit_bytes=48 * 1024 * 1024,
        ),
    )(output, target2d, smooth_row, plogp_row)

    # Final tiny reduction of lane-dense per-tile partials (done by XLA).
    return jnp.sum(partials)


def _reference(output, target, one_hot, confidence, ignore_index):
    B, V = output.shape
    mp = jnp.broadcast_to(one_hot[None, :], (B, V))
    mp = mp.at[jnp.arange(B), target].set(confidence)
    mp = jnp.where((target == ignore_index)[:, None], 0.0, mp)
    return jnp.sum(
        jnp.where(mp > 0, mp * (jnp.log(jnp.where(mp > 0, mp, 1.0)) - output), 0.0)
    )


if __name__ == "__main__":
    # --- Test 1: module config matching the original script (single tile) ---
    label_smoothing = 0.1
    tgt_vocab_size = 128
    ignore_index = 0
    confidence = 1.0 - label_smoothing
    smoothing_value = label_smoothing / (tgt_vocab_size - 2)

    one_hot = jnp.full((tgt_vocab_size,), smoothing_value, jnp.float32)
    one_hot = one_hot.at[ignore_index].set(0.0)

    B = 16
    key = jax.random.PRNGKey(0)
    k1, k2, k3, k4 = jax.random.split(key, 4)
    logits = jax.random.normal(k1, (B, tgt_vocab_size), jnp.float32)
    output = jax.nn.log_softmax(logits, axis=-1)
    target = jax.random.randint(k2, (B,), 0, tgt_vocab_size, jnp.int32)
    target = target.at[3].set(ignore_index)  # exercise the mask path

    loss = label_smoothing_loss(output, target, one_hot, confidence, ignore_index)
    loss = jax.block_until_ready(loss)
    ref = _reference(output, target, one_hot, confidence, ignore_index)
    assert jnp.allclose(loss, ref, rtol=1e-5, atol=1e-4), (loss, ref)

    # --- Test 2: non-divisible B/V with multi-tile grid (exercises padding,
    #             vocab-axis accumulation and parallel batch tiles) ---
    B2, V2 = 37, 300
    conf2 = 1.0 - label_smoothing
    sm2 = label_smoothing / (V2 - 2)
    one_hot2 = jnp.full((V2,), sm2, jnp.float32).at[ignore_index].set(0.0)
    logits2 = jax.random.normal(k3, (B2, V2), jnp.float32)
    output2 = jax.nn.log_softmax(logits2, axis=-1)
    target2 = jax.random.randint(k4, (B2,), 0, V2, jnp.int32)
    target2 = target2.at[3].set(ignore_index)

    loss2 = label_smoothing_loss(output2, target2, one_hot2, conf2, ignore_index,
                                 tb=16, tv=128)
    loss2 = jax.block_until_ready(loss2)
    ref2 = _reference(output2, target2, one_hot2, conf2, ignore_index)
    assert jnp.allclose(loss2, ref2, rtol=1e-5, atol=1e-4), (loss2, ref2)

    print("KERNEL_OK")
</pallas_src>

<mosaic_0001>
module attributes {stable_mosaic.version = 11 : i64} {
  func.func @kernel(%arg0: i32, %arg1: i32, %arg2: memref<16x128xf32, #tpu.memory_space<vmem>>, %arg3: memref<16x1xi32, #tpu.memory_space<vmem>>, %arg4: memref<1x128xf32, #tpu.memory_space<vmem>>, %arg5: memref<1x128xf32, #tpu.memory_space<vmem>>, %arg6: memref<1x8x128xf32, #tpu.memory_space<vmem>>) attributes {dimension_semantics = [#tpu.dimension_semantics<parallel>, #tpu.dimension_semantics<arbitrary>], iteration_bounds = array<i64: 1, 1>, scalar_prefetch = 0 : i64, scratch_operands = 0 : i64, tpu.core_type = #tpu.core_type<tc>, window_params = [{transform_indices = @transform_0, window_bounds = array<i64: 16, 128>}, {transform_indices = @transform_1, window_bounds = array<i64: 16, 1>}, {transform_indices = @transform_2, window_bounds = array<i64: 1, 128>}, {transform_indices = @transform_3, window_bounds = array<i64: 1, 128>}, {transform_indices = @transform_4, window_bounds = array<i64: 1, 8, 128>}]} {
    %c0_i32 = arith.constant 0 : i32
    %0 = arith.cmpi eq, %arg1, %c0_i32 : i32
    %1 = arith.extui %0 : i1 to i32
    %c0_i32_0 = arith.constant 0 : i32
    %2 = arith.cmpi ne, %1, %c0_i32_0 : i32
    scf.if %2 {
      %cst_16 = arith.constant 0.000000e+00 : f32
      %36 = vector.broadcast %cst_16 : f32 to vector<1x8x128xf32>
      %c0_17 = arith.constant 0 : index
      %c0_18 = arith.constant 0 : index
      %c0_19 = arith.constant 0 : index
      %37 = vector.load %arg6[%c0_17, %c0_18, %c0_19] : memref<1x8x128xf32, #tpu.memory_space<vmem>>, vector<1x8x128xf32>
      tpu.vector_store %arg6[%c0_17, %c0_18, %c0_19], %36 {strides = array<i32>} : memref<1x8x128xf32, #tpu.memory_space<vmem>>, vector<1x8x128xf32>,
    } else {
    }
    %c0 = arith.constant 0 : index
    %c0_1 = arith.constant 0 : index
    %3 = vector.load %arg2[%c0, %c0_1] : memref<16x128xf32, #tpu.memory_space<vmem>>, vector<16x128xf32>
    %c0_2 = arith.constant 0 : index
    %c0_3 = arith.constant 0 : index
    %4 = vector.load %arg3[%c0_2, %c0_3] : memref<16x1xi32, #tpu.memory_space<vmem>>, vector<16x1xi32>
    %c0_4 = arith.constant 0 : index
    %c0_5 = arith.constant 0 : index
    %5 = vector.load %arg4[%c0_4, %c0_5] : memref<1x128xf32, #tpu.memory_space<vmem>>, vector<1x128xf32>
    %c0_6 = arith.constant 0 : index
    %c0_7 = arith.constant 0 : index
    %6 = vector.load %arg5[%c0_6, %c0_7] : memref<1x128xf32, #tpu.memory_space<vmem>>, vector<1x128xf32>
    %c128_i32 = arith.constant 128 : i32
    %7 = arith.muli %arg1, %c128_i32 : i32
    %8 = vector.broadcast %7 : i32 to vector<16x1xi32>
    %9 = arith.subi %4, %8 : vector<16x1xi32>
    %10 = tpu.iota {dimensions = array<i32: 1>} : vector<16x128xi32>
    %11 = vector.broadcast %9 : vector<16x1xi32> to vector<16x128xi32>
    %12 = arith.cmpi eq, %10, %11 : vector<16x128xi32>
    %cst = arith.constant 0.899999976 : f32
    %13 = vector.broadcast %cst : f32 to vector<16x128xf32>
    %14 = vector.shape_cast %5 : vector<1x128xf32> to vector<1x128xf32>
    %15 = vector.broadcast %14 : vector<1x128xf32> to vector<16x128xf32>
    %16 = arith.select %12, %13, %15 : vector<16x128xi1>, vector<16x128xf32>
    %cst_8 = arith.constant -0.0948244631 : f32
    %17 = vector.broadcast %cst_8 : f32 to vector<16x128xf32>
    %18 = vector.shape_cast %6 : vector<1x128xf32> to vector<1x128xf32>
    %19 = vector.broadcast %18 : vector<1x128xf32> to vector<16x128xf32>
    %20 = arith.select %12, %17, %19 : vector<16x128xi1>, vector<16x128xf32>
    %21 = arith.mulf %16, %3 : vector<16x128xf32>
    %22 = arith.subf %20, %21 : vector<16x128xf32>
    %c0_i32_9 = arith.constant 0 : i32
    %23 = vector.broadcast %c0_i32_9 : i32 to vector<16x1xi32>
    %24 = arith.cmpi ne, %4, %23 : vector<16x1xi32>
    %25 = arith.extui %24 : vector<16x1xi1> to vector<16x1xi32>
    %26 = arith.sitofp %25 : vector<16x1xi32> to vector<16x1xf32>
    %27 = vector.broadcast %26 : vector<16x1xf32> to vector<16x128xf32>
    %28 = arith.mulf %22, %27 : vector<16x128xf32>
    %29 = vector.extract_strided_slice %28 {offsets = [0, 0], sizes = [8, 128], strides = [1, 1]} : vector<16x128xf32> to vector<8x128xf32>
    %30 = vector.extract_strided_slice %28 {offsets = [8, 0], sizes = [8, 128], strides = [1, 1]} : vector<16x128xf32> to vector<8x128xf32>
    %31 = arith.addf %29, %30 : vector<8x128xf32>
    %c0_10 = arith.constant 0 : index
    %c0_11 = arith.constant 0 : index
    %c0_12 = arith.constant 0 : index
    %32 = vector.load %arg6[%c0_10, %c0_11, %c0_12] : memref<1x8x128xf32, #tpu.memory_space<vmem>>, vector<1x8x128xf32>
    %33 = vector.shape_cast %31 : vector<8x128xf32> to vector<1x8x128xf32>
    %34 = arith.addf %32, %33 : vector<1x8x128xf32>
    %c0_13 = arith.constant 0 : index
    %c0_14 = arith.constant 0 : index
    %c0_15 = arith.constant 0 : index
    %35 = vector.load %arg6[%c0_13, %c0_14, %c0_15] : memref<1x8x128xf32, #tpu.memory_space<vmem>>, vector<1x8x128xf32>
    tpu.vector_store %arg6[%c0_13, %c0_14, %c0_15], %34 {strides = array<i32>} : memref<1x8x128xf32, #tpu.memory_space<vmem>>, vector<1x8x128xf32>,
    return
  }
  func.func @transform_0(%arg0: i32, %arg1: i32) -> (i32, i32) {
    %c0_i32 = arith.constant 0 : i32
    return %arg0, %arg1 : i32, i32
  }
  func.func @transform_1(%arg0: i32, %arg1: i32) -> (i32, i32) {
    %c0_i32 = arith.constant 0 : i32
    %c0_i32_0 = arith.constant 0 : i32
    return %arg0, %c0_i32 : i32, i32
  }
  func.func @transform_2(%arg0: i32, %arg1: i32) -> (i32, i32) {
    %c0_i32 = arith.constant 0 : i32
    %c0_i32_0 = arith.constant 0 : i32
    return %c0_i32, %arg1 : i32, i32
  }
  func.func @transform_3(%arg0: i32, %arg1: i32) -> (i32, i32) {
    %c0_i32 = arith.constant 0 : i32
    %c0_i32_0 = arith.constant 0 : i32
    return %c0_i32, %arg1 : i32, i32
  }
  func.func @transform_4(%arg0: i32, %arg1: i32) -> (i32, i32, i32) {
    %c0_i32 = arith.constant 0 : i32
    %c0_i32_0 = arith.constant 0 : i32
    %c0_i32_1 = arith.constant 0 : i32
    return %arg0, %c0_i32, %c0_i32_0 : i32, i32, i32
  }
}

</mosaic_0001>

<bundles_post_ra>
// kernel: tpu_custom_call.1
= control target key start
LH: loop header
LB: loop body
LE: loop exit
PB: predicated region body
PF: predicated region fallthrough
CT: control target
= control target key end

     0   :  { %v137_v2 = vmov 0   ;;  %v138_v3 = vmov 0.0   ;;  %s195_s0 = inlined_call_operand.vmem [shape: f32[16,128], index: 0, kind: input, shape index: {}]   ;;  %s196_s1 = inlined_call_operand.vmem [shape: s32[16,1], index: 1, kind: input, shape index: {}]   ;;  %s197_s2 = inlined_call_operand.vmem [shape: f32[1,128], index: 2, kind: input, shape index: {}]   ;;  %s198_s3 = inlined_call_operand.vmem [shape: f32[1,128], index: 3, kind: input, shape index: {}]   ;;  %s199_s4 = inlined_call_operand.hbm [shape: f32[1,8,128], index: 4, kind: output, shape index: {}]  }
   0x1   :  { %v25_v0 = vld [vmem:[%s196_s1] sm:$0xff]  ;;  %v26_v1 = vld [vmem:[%s196_s1 + $0x8] sm:$0xff]  ;;  %106 = vset.pattern.permute.xlu0 %v137_v2  ;;  %107 = vset.pattern.permute.xlu1 %v137_v2 }
   0x2   :  { %vm63_vm0 = vcmp.ne.s32.totalorder %v25_v0, 0  ;;  %vm64_vm1 = vcmp.ne.s32.totalorder %v26_v1, 0  ;;  %36 = vperm.xlu0 %106, %v25_v0  }
   0x3   :  { %v101_v4 = vsel %vm63_vm0, 1.0, %v138_v3  ;;  %v102_v5 = vsel %vm64_vm1, 1.0, %v138_v3 }
   0x4   :  { %9 = vsyncpa [#allocation3], 0  ;;  %v108_v6 = vpack.i.bf16 %v102_v5, %v101_v4  ;;  %v33_v7 = vlaneseq  ;;  %v99_v9 = vld [vmem:[%s197_s2] ss:$0 sm:$0xff]  ;;  %v24_v16 = vld [vmem:[%s195_s0 + $0x8] sm:$0xff]  ;;  %s139_s2 = smov [#allocation2]  }
   0x5   :  { %v23_v11 = vld [vmem:[%s195_s0] sm:$0xff] }
   0x6   :  { %109 = vperm.xlu1 %107, %v108_v6   ;;  %39 = vperm.xlu0 %106, %v26_v1   ;;  %v34_v8 = vand.u32 127, %v33_v7  ;;  %v100_v13 = vld [vmem:[%s198_s3] ss:$0 sm:$0xff]  ;;  %s91_s3 = sshll.u32 %s139_s2, 4  ;;  %s92_s3 = int_to_ptr.vmem [resolvable:$true] %s91_s3 }
   0x7   :  { %s113_s26 = scalar_lea.vmem %s92_s3, 128  ;;  %p118_p1 = scmp.lt.s32.totalorder %s92_s3, %s92_s3 }
   0x8   :  { %p114_p0 = scmp.ne.s32.totalorder %s92_s3, %s113_s26  ;;  %p119_p2 = scmp.lt.s32.totalorder %s113_s26, %s113_s26 }
   0xa   :  { %p120_p3 = por %p119_p2, %p118_p1 }
   0xc   :  { %p121_p4 = pnand %p120_p3, %p114_p0 }
  0x81   :  { %v37_v10 = vpop.permute.xlu0 %36 }
  0x82   :  { %vm41_vm2 = vcmp.eq.s32.totalorder %v34_v8, %v37_v10 }
  0x83   :  { %v49_v12 = vsel %vm41_vm2, 0.9, %v99_v9  ;;  %v57_v18 = vsel %vm41_vm2, -0.09482446, %v100_v13 }
  0x84   :  { %v59_v14 = vmul.f32 %v49_v12, %v23_v11 }
  0x85   :  { %v40_v15 = vpop.permute.xlu0 %39  ;;  %v110_v17 = vpop.permute.xlu1 %109 }
  0x86   :  { %vm42_vm3 = vcmp.eq.s32.totalorder %v34_v8, %v40_v15  ;;  %v61_v20 = vsub.f32 %v57_v18, %v59_v14  ;;  %v112_v22 = vunpack.i.h.bf16 %v110_v17  ;;  %v111_v23 = vunpack.i.l.bf16 %v110_v17 }
  0x87   :  { %v50_v19 = vsel %vm42_vm3, 0.9, %v99_v9  ;;  %v58_v24 = vsel %vm42_vm3, -0.09482446, %v100_v13 }
  0x88   :  { %v60_v21 = vmul.f32 %v50_v19, %v24_v16  ;;  %v79_v27 = vmul.f32 %v111_v23, %v61_v20 }
  0x8a   :  { %v62_v25 = vsub.f32 %v58_v24, %v60_v21 }
  0x8c   :  { %v80_v26 = vmul.f32 %v112_v22, %v62_v25 }
  0x8e   :  { %v81_v28 = vadd.f32 %v80_v26, %v79_v27 }
  0x90   :  { %84 = vst [vmem:[#allocation2] sm:$0xff] %v81_v28 }
  0x91   :  { %124 = shalt.err (!%p121_p4)
}
  0x92   :  { %s125_s28 = scalar_lea.hbm %s199_s4, 128 }
  0x93   :  { %p126_p5 = scmp.ne.s32.totalorder %s199_s4, %s125_s28  ;;  %p129_p6 = scmp.lt.u32.totalorder %s125_s28, %s199_s4 }
  0x95   :  { %p131_p7 = pnand %p129_p6, %p126_p5 }
  0x97   :  { %134 = shalt.err (!%p131_p7)
}
  0x98   :  { %94 = dma.vmem_to_hbm [thread:$0]  %s92_s3, 128, %s199_s4, [#allocation3]  }
  0x99   :  { %135 = dma.done.wait [#allocation3], 128  }
  0x9a   :  { %136 = vsyncadd [#allocation3], 4294967168 }
  0x9b   :  { %98 = vsyncpa [#allocation3], 1 }

</bundles_post_ra>
